<compile_context>
chip_gen: v7x
topology: tpu7x:2x2x1
jax: 0.10.0
libtpu: 0.0.40
codegen_flags: <defaults>
</compile_context>

<pallas_src>
import jax
import jax.numpy as jnp
from jax.experimental import pallas as pl
from jax.experimental.pallas import tpu as pltpu

F_PAD = 128             # hidden/feature lane width inside the kernel (VMEM only)
DEFAULT_TILE_B = 2048   # batch tile; per-grid-step overhead (~0.35us) amortized
_SMALL_BATCH = 64       # below this, plain JAX beats kernel-launch overhead


def _round_up(n, m):
    return ((n + m - 1) // m) * m


def _mlp_kernel(x_ref, w1_ref, w2_ref, w3_ref, b_ref, o_ref, xp_ref):
    n_in = x_ref.shape[1]                      # 11 (static)

    # Zero-pad the raw (tb, 11) input block to a lane-dense (tb, 128) slab in
    # VMEM scratch.  Zeroing every step keeps padded lanes exactly zero no
    # matter how the grid is split across cores (v7x runs the batch axis on
    # both TensorCores, so "init only at program_id==0" would be unsafe).
    xp_ref[...] = jnp.zeros_like(xp_ref)
    xp_ref[:, :n_in] = x_ref[...]
    x = xp_ref[...].astype(jnp.bfloat16)       # (tb, 128) bf16 MXU operand

    b = b_ref[...]                             # (8, 128) f32, rows 0..2 used
    b1 = b[0:1, :]
    b2 = b[1:2, :]
    b3 = b[2:3, :]

    # fc1 + ReLU  (bf16 MXU matmul, f32 accumulation; bias/ReLU in f32 on VPU)
    h1 = jnp.dot(x, w1_ref[...], preferred_element_type=jnp.float32) + b1
    h1 = jnp.maximum(h1, 0.0)

    # fc2 + ReLU
    h2 = jnp.dot(h1.astype(jnp.bfloat16), w2_ref[...],
                 preferred_element_type=jnp.float32) + b2
    h2 = jnp.maximum(h2, 0.0)

    # out (no activation); only the real output columns hit HBM.
    y = jnp.dot(h2.astype(jnp.bfloat16), w3_ref[...],
                preferred_element_type=jnp.float32) + b3
    o_ref[...] = y[:, : o_ref.shape[1]].astype(o_ref.dtype)


def pad_params(params):
    """Pad weights to (128, 128) bf16 and stack biases into one (8, 128) f32.

    Padded weight rows/cols and bias lanes are exactly zero, so padded lanes
    stay identically zero through every layer (ReLU(0) = 0)."""
    w1, b1, w2, b2, w3, b3 = params

    def pad_w(w):
        wp = jnp.zeros((F_PAD, F_PAD), jnp.float32)
        wp = wp.at[: w.shape[0], : w.shape[1]].set(jnp.asarray(w, jnp.float32))
        return wp.astype(jnp.bfloat16)

    biases = jnp.zeros((8, F_PAD), jnp.float32)
    for row, b in enumerate((b1, b2, b3)):
        bv = jnp.asarray(b, jnp.float32).reshape(-1)
        biases = biases.at[row, : bv.shape[0]].set(bv)

    return pad_w(w1), pad_w(w2), pad_w(w3), biases


def _choose_tile(batch, tile_b):
    """Batch tile: multiple of 8, capped at tile_b, and capped at ceil(B/2)
    so the grid has >= 2 steps whenever the batch allows (v7x megacore)."""
    b8 = _round_up(batch, 8)
    tb = min(tile_b, b8)
    if b8 >= 16:
        tb = min(tb, _round_up((b8 + 1) // 2, 8))
    return tb


def nn_forward(x, params, *, tile_b=DEFAULT_TILE_B):
    """Fused 3-layer MLP forward on TPU via a single batch-tiled Pallas kernel.

    `params` are the raw (in_features, out_features) weights / biases as
    produced by `init_params` (PyTorch-transposed layout)."""
    batch, feat = x.shape
    out_features = params[4].shape[1]

    w1p, w2p, w3p, biases = pad_params(params)
    x = x.astype(jnp.float32)

    tb = _choose_tile(batch, tile_b)
    grid = pl.cdiv(batch, tb)   # partial last tile is masked by Pallas

    grid_spec = pltpu.PrefetchScalarGridSpec(
        num_scalar_prefetch=0,
        grid=(grid,),
        in_specs=[
            pl.BlockSpec((tb, feat), lambda i: (i, 0)),       # x: raw 11-wide rows
            pl.BlockSpec((F_PAD, F_PAD), lambda i: (0, 0)),   # w1 (bf16, resident)
            pl.BlockSpec((F_PAD, F_PAD), lambda i: (0, 0)),   # w2
            pl.BlockSpec((F_PAD, F_PAD), lambda i: (0, 0)),   # w3
            pl.BlockSpec((8, F_PAD), lambda i: (0, 0)),       # stacked biases
        ],
        out_specs=pl.BlockSpec((tb, out_features), lambda i: (i, 0)),
        scratch_shapes=[pltpu.VMEM((tb, F_PAD), jnp.float32)],  # padded x slab
    )

    # Advisory cost for XLA's scheduler (post-fix traffic: narrow x/out).
    cost = pl.CostEstimate(
        flops=2 * batch * F_PAD * F_PAD * 3,
        transcendentals=0,
        bytes_accessed=(4 * batch * feat + 4 * batch * out_features
                        + 2 * 3 * F_PAD * F_PAD + 4 * 8 * F_PAD),
    )

    # Note: on v7x, pltpu.CORE_PARALLEL on the batch axis (with grid >= 2)
    # would make the two-TensorCore split explicit; "parallel" is the
    # portable choice across v5e/v6e/v7x.
    return pl.pallas_call(
        _mlp_kernel,
        out_shape=jax.ShapeDtypeStruct((batch, out_features), jnp.float32),
        grid_spec=grid_spec,
        compiler_params=pltpu.CompilerParams(
            dimension_semantics=("parallel",),
            vmem_limit_bytes=32 * 1024 * 1024,   # safe on v5e/v6e/v7x
        ),
        cost_estimate=cost,
    )(x, w1p, w2p, w3p, biases)


def nn_forward_auto(x, params):
    """Dispatch: tiny batches go through plain JAX (launch overhead dominates),
    throughput batches go through the Pallas kernel."""
    if x.shape[0] < _SMALL_BATCH:
        return _reference(x, params)
    return nn_forward(x, params)


def init_params(key, input_features=11, layer1=20, layer2=20, out_features=2):
    """Deterministic init mimicking nn.Linear's U(-1/sqrt(fan_in), 1/sqrt(fan_in)).
    Weights stored as (in_features, out_features)."""
    ks = jax.random.split(key, 6)

    def linear(kw, kb, fan_in, fan_out):
        bound = 1.0 / jnp.sqrt(fan_in)
        w = jax.random.uniform(kw, (fan_in, fan_out), jnp.float32, -bound, bound)
        b = jax.random.uniform(kb, (1, fan_out), jnp.float32, -bound, bound)
        return w, b

    w1, b1 = linear(ks[0], ks[1], input_features, layer1)
    w2, b2 = linear(ks[2], ks[3], layer1, layer2)
    w3, b3 = linear(ks[4], ks[5], layer2, out_features)
    return (w1, b1, w2, b2, w3, b3)


def _reference(x, params):
    """Plain-JAX f32 reference (matches the PyTorch module)."""
    w1, b1, w2, b2, w3, b3 = params
    h1 = jnp.maximum(x @ w1 + b1, 0.0)
    h2 = jnp.maximum(h1 @ w2 + b2, 0.0)
    return h2 @ w3 + b3


def _reference_emulated(x, params):
    """Reference that emulates the kernel's bf16-operand / f32-accumulate math,
    for a tight correctness check of the kernel structure."""
    w1p, w2p, w3p, biases = pad_params(params)
    out_features = params[4].shape[1]

    def q(a):  # bf16 round-trip, like the in-kernel operand casts
        return a.astype(jnp.bfloat16).astype(jnp.float32)

    xq = jnp.zeros((x.shape[0], F_PAD), jnp.float32).at[:, : x.shape[1]].set(x)
    xq = q(xq)
    h1 = jnp.maximum(xq @ w1p.astype(jnp.float32) + biases[0:1], 0.0)
    h2 = jnp.maximum(q(h1) @ w2p.astype(jnp.float32) + biases[1:2], 0.0)
    y = q(h2) @ w3p.astype(jnp.float32) + biases[2:3]
    return y[:, :out_features]


if __name__ == "__main__":
    key = jax.random.PRNGKey(0)
    k_x, k_x2, k_p = jax.random.split(key, 3)

    params = init_params(k_p, input_features=11, layer1=20, layer2=20, out_features=2)

    # Small batch (same shape as the original spec's usage).
    batch = 8
    x = jax.random.normal(k_x, (batch, 11), dtype=jnp.float32)
    y = jax.block_until_ready(nn_forward(x, params))
    assert y.shape == (batch, 2)
    # Tight check against the bf16-emulating reference (validates the kernel).
    assert jnp.allclose(y, _reference_emulated(x, params), atol=2e-3, rtol=2e-3)
    # Loose check against the pure-f32 module semantics (bf16 MXU operands).
    assert jnp.allclose(y, _reference(x, params), atol=1e-1, rtol=1e-1)

    # Larger batch: grid = 2, non-divisible batch exercises the masked tail tile.
    batch2 = 1000
    x2 = jax.random.normal(k_x2, (batch2, 11), dtype=jnp.float32)
    y2 = jax.block_until_ready(nn_forward(x2, params))
    assert y2.shape == (batch2, 2)
    assert jnp.allclose(y2, _reference_emulated(x2, params), atol=2e-3, rtol=2e-3)
    assert jnp.allclose(y2, _reference(x2, params), atol=1e-1, rtol=1e-1)

    print("KERNEL_OK")
</pallas_src>

<mosaic_0001>
module attributes {stable_mosaic.version = 11 : i64} {
  func.func @_mlp_kernel(%arg0: i32, %arg1: memref<8x11xf32, #tpu.memory_space<vmem>>, %arg2: memref<128x128xbf16, #tpu.memory_space<vmem>>, %arg3: memref<128x128xbf16, #tpu.memory_space<vmem>>, %arg4: memref<128x128xbf16, #tpu.memory_space<vmem>>, %arg5: memref<8x128xf32, #tpu.memory_space<vmem>>, %arg6: memref<8x2xf32, #tpu.memory_space<vmem>>, %arg7: memref<8x128xf32, #tpu.memory_space<vmem>>) attributes {dimension_semantics = [#tpu.dimension_semantics<parallel>], iteration_bounds = array<i64: 1>, scalar_prefetch = 0 : i64, scratch_operands = 1 : i64, tpu.core_type = #tpu.core_type<tc>, window_params = [{transform_indices = @transform_0, window_bounds = array<i64: 8, 11>}, {pipeline_mode = #tpu.pipeline_mode<synchronous>, transform_indices = @transform_1, window_bounds = array<i64: 128, 128>}, {pipeline_mode = #tpu.pipeline_mode<synchronous>, transform_indices = @transform_2, window_bounds = array<i64: 128, 128>}, {pipeline_mode = #tpu.pipeline_mode<synchronous>, transform_indices = @transform_3, window_bounds = array<i64: 128, 128>}, {pipeline_mode = #tpu.pipeline_mode<synchronous>, transform_indices = @transform_4, window_bounds = array<i64: 8, 128>}, {transform_indices = @transform_5, window_bounds = array<i64: 8, 2>}]} {
    %cst = arith.constant 0.000000e+00 : f32
    %0 = vector.broadcast %cst : f32 to vector<8x128xf32>
    %c0 = arith.constant 0 : index
    %c0_0 = arith.constant 0 : index
    %1 = vector.load %arg7[%c0, %c0_0] : memref<8x128xf32, #tpu.memory_space<vmem>>, vector<8x128xf32>
    tpu.vector_store %arg7[%c0, %c0_0], %0 {strides = array<i32>} : memref<8x128xf32, #tpu.memory_space<vmem>>, vector<8x128xf32>,
    %c0_1 = arith.constant 0 : index
    %c0_2 = arith.constant 0 : index
    %2 = vector.load %arg1[%c0_1, %c0_2] : memref<8x11xf32, #tpu.memory_space<vmem>>, vector<8x11xf32>
    %c0_3 = arith.constant 0 : index
    %c0_4 = arith.constant 0 : index
    %3 = vector.load %arg7[%c0_3, %c0_4] : memref<8x128xf32, #tpu.memory_space<vmem>>, vector<8x11xf32>
    tpu.vector_store %arg7[%c0_3, %c0_4], %2 {strides = array<i32>} : memref<8x128xf32, #tpu.memory_space<vmem>>, vector<8x11xf32>,
    %c0_5 = arith.constant 0 : index
    %c0_6 = arith.constant 0 : index
    %4 = vector.load %arg7[%c0_5, %c0_6] : memref<8x128xf32, #tpu.memory_space<vmem>>, vector<8x128xf32>
    %5 = arith.truncf %4 : vector<8x128xf32> to vector<8x128xbf16>
    %c0_7 = arith.constant 0 : index
    %c0_8 = arith.constant 0 : index
    %6 = vector.load %arg5[%c0_7, %c0_8] : memref<8x128xf32, #tpu.memory_space<vmem>>, vector<8x128xf32>
    %7 = vector.extract_strided_slice %6 {offsets = [0, 0], sizes = [1, 128], strides = [1, 1]} : vector<8x128xf32> to vector<1x128xf32>
    %8 = vector.extract_strided_slice %6 {offsets = [1, 0], sizes = [1, 128], strides = [1, 1]} : vector<8x128xf32> to vector<1x128xf32>
    %9 = vector.extract_strided_slice %6 {offsets = [2, 0], sizes = [1, 128], strides = [1, 1]} : vector<8x128xf32> to vector<1x128xf32>
    %c0_9 = arith.constant 0 : index
    %c0_10 = arith.constant 0 : index
    %10 = vector.load %arg2[%c0_9, %c0_10] : memref<128x128xbf16, #tpu.memory_space<vmem>>, vector<128x128xbf16>
    %cst_11 = arith.constant dense<0.000000e+00> : vector<8x128xf32>
    %11 = tpu.matmul %5, %10, %cst_11 {dimension_numbers = #tpu.dot_dimension_numbers<[1], [0], [0], [1], [0, 0, 1, 1], [], []>} : vector<8x128xbf16>, vector<128x128xbf16>, vector<8x128xf32> -> vector<8x128xf32>
    %12 = vector.broadcast %7 : vector<1x128xf32> to vector<8x128xf32>
    %13 = arith.addf %11, %12 : vector<8x128xf32>
    %cst_12 = arith.constant 0.000000e+00 : f32
    %14 = vector.broadcast %cst_12 : f32 to vector<8x128xf32>
    %15 = arith.maximumf %13, %14 : vector<8x128xf32>
    %16 = arith.truncf %15 : vector<8x128xf32> to vector<8x128xbf16>
    %c0_13 = arith.constant 0 : index
    %c0_14 = arith.constant 0 : index
    %17 = vector.load %arg3[%c0_13, %c0_14] : memref<128x128xbf16, #tpu.memory_space<vmem>>, vector<128x128xbf16>
    %cst_15 = arith.constant dense<0.000000e+00> : vector<8x128xf32>
    %18 = tpu.matmul %16, %17, %cst_15 {dimension_numbers = #tpu.dot_dimension_numbers<[1], [0], [0], [1], [0, 0, 1, 1], [], []>} : vector<8x128xbf16>, vector<128x128xbf16>, vector<8x128xf32> -> vector<8x128xf32>
    %19 = vector.broadcast %8 : vector<1x128xf32> to vector<8x128xf32>
    %20 = arith.addf %18, %19 : vector<8x128xf32>
    %cst_16 = arith.constant 0.000000e+00 : f32
    %21 = vector.broadcast %cst_16 : f32 to vector<8x128xf32>
    %22 = arith.maximumf %20, %21 : vector<8x128xf32>
    %23 = arith.truncf %22 : vector<8x128xf32> to vector<8x128xbf16>
    %c0_17 = arith.constant 0 : index
    %c0_18 = arith.constant 0 : index
    %24 = vector.load %arg4[%c0_17, %c0_18] : memref<128x128xbf16, #tpu.memory_space<vmem>>, vector<128x128xbf16>
    %cst_19 = arith.constant dense<0.000000e+00> : vector<8x128xf32>
    %25 = tpu.matmul %23, %24, %cst_19 {dimension_numbers = #tpu.dot_dimension_numbers<[1], [0], [0], [1], [0, 0, 1, 1], [], []>} : vector<8x128xbf16>, vector<128x128xbf16>, vector<8x128xf32> -> vector<8x128xf32>
    %26 = vector.broadcast %9 : vector<1x128xf32> to vector<8x128xf32>
    %27 = arith.addf %25, %26 : vector<8x128xf32>
    %28 = vector.extract_strided_slice %27 {offsets = [0, 0], sizes = [8, 2], strides = [1, 1]} : vector<8x128xf32> to vector<8x2xf32>
    %c0_20 = arith.constant 0 : index
    %c0_21 = arith.constant 0 : index
    %29 = vector.load %arg6[%c0_20, %c0_21] : memref<8x2xf32, #tpu.memory_space<vmem>>, vector<8x2xf32>
    tpu.vector_store %arg6[%c0_20, %c0_21], %28 {strides = array<i32>} : memref<8x2xf32, #tpu.memory_space<vmem>>, vector<8x2xf32>,
    return
  }
  func.func @transform_0(%arg0: i32) -> (i32, i32) {
    %c0_i32 = arith.constant 0 : i32
    %c0_i32_0 = arith.constant 0 : i32
    return %arg0, %c0_i32 : i32, i32
  }
  func.func @transform_1(%arg0: i32) -> (i32, i32) {
    %c0_i32 = arith.constant 0 : i32
    %c0_i32_0 = arith.constant 0 : i32
    %c0_i32_1 = arith.constant 0 : i32
    return %c0_i32, %c0_i32_0 : i32, i32
  }
  func.func @transform_2(%arg0: i32) -> (i32, i32) {
    %c0_i32 = arith.constant 0 : i32
    %c0_i32_0 = arith.constant 0 : i32
    %c0_i32_1 = arith.constant 0 : i32
    return %c0_i32, %c0_i32_0 : i32, i32
  }
  func.func @transform_3(%arg0: i32) -> (i32, i32) {
    %c0_i32 = arith.constant 0 : i32
    %c0_i32_0 = arith.constant 0 : i32
    %c0_i32_1 = arith.constant 0 : i32
    return %c0_i32, %c0_i32_0 : i32, i32
  }
  func.func @transform_4(%arg0: i32) -> (i32, i32) {
    %c0_i32 = arith.constant 0 : i32
    %c0_i32_0 = arith.constant 0 : i32
    %c0_i32_1 = arith.constant 0 : i32
    return %c0_i32, %c0_i32_0 : i32, i32
  }
  func.func @transform_5(%arg0: i32) -> (i32, i32) {
    %c0_i32 = arith.constant 0 : i32
    %c0_i32_0 = arith.constant 0 : i32
    return %arg0, %c0_i32 : i32, i32
  }
}

</mosaic_0001>

<bundles_post_ra>
// kernel: tpu_custom_call.1
= control target key start
LH: loop header
LB: loop body
LE: loop exit
PB: predicated region body
PF: predicated region fallthrough
CT: control target
= control target key end

     0   :  { %10 = vsyncpa [#allocation4], 0  ;;  %s787_s0 = inlined_call_operand.hbm [shape: f32[8,11], index: 0, kind: input, shape index: {}]   ;;  %s788_s1 = inlined_call_operand.hbm [shape: bf16[128,128], index: 1, kind: input, shape index: {}]   ;;  %s789_s2 = inlined_call_operand.hbm [shape: bf16[128,128], index: 2, kind: input, shape index: {}]   ;;  %s790_s3 = inlined_call_operand.hbm [shape: bf16[128,128], index: 3, kind: input, shape index: {}]   ;;  %s791_s4 = inlined_call_operand.vmem [shape: f32[8,128], index: 4, kind: input, shape index: {}]   ;;  %s792_s5 = inlined_call_operand.vmem [shape: f32[8,2], index: 5, kind: output, shape index: {}]  }
   0x1   :  { %11 = vsyncpa [#allocation6], 0 }
   0x2   :  { %12 = vsyncpa [#allocation9], 0  ;;  %s655_s18 = smov [#allocation5]   ;;  %s561_s22 = scalar_lea.hbm %s788_s1, 1024 }
   0x3   :  { %s28_s19 = sshll.u32 %s655_s18, 4  ;;  %p562_p0 = scmp.ne.s32.totalorder %s788_s1, %s561_s22  ;;  %s29_s19 = int_to_ptr.vmem [resolvable:$true] %s28_s19 }
   0x4   :  { %p565_p1 = scmp.lt.u32.totalorder %s561_s22, %s788_s1 }
   0x6   :  { %p567_p2 = pnand %p565_p1, %p562_p0 }
   0x8   :  { %570 = shalt.err (!%p567_p2)
}
   0x9   :  { %s571_s27 = scalar_lea.vmem %s29_s19, 1024  ;;  %p576_p4 = scmp.lt.s32.totalorder %s29_s19, %s29_s19 }
   0xa   :  { %p572_p3 = scmp.ne.s32.totalorder %s29_s19, %s571_s27  ;;  %p577_p5 = scmp.lt.s32.totalorder %s571_s27, %s571_s27 }
   0xc   :  { %p578_p6 = por %p577_p5, %p576_p4 }
   0xe   :  { %p579_p7 = pnand %p578_p6, %p572_p3 }
  0x10   :  { %582 = shalt.err (!%p579_p7)
}
  0x11   :  { %s656_s28 = smov 64   ;;  %s657_s29 = smov 4  }
  0x12   :  { %34 = dma.hbm_to_vmem [thread:$0]  %s788_s1, 1024, %s29_s19, [#allocation6], %s656_s28, %s656_s28, %s657_s29  }
  0x13   :  { %s658_s7 = smov [#allocation3]   ;;  %s659_s9 = smov [#allocation7]  }
  0x14   :  { %s19_s8 = sshll.u32 %s658_s7, 4  ;;  %s40_s10 = sshll.u32 %s659_s9, 4  ;;  %s20_s8 = int_to_ptr.vmem [resolvable:$true] %s19_s8  ;;  %s41_s10 = int_to_ptr.vmem [resolvable:$true] %s40_s10 }
  0x15   :  { %s583_s13 = scalar_lea.hbm %s787_s0, 128 }
  0x16   :  { %p584_p8 = scmp.ne.s32.totalorder %s787_s0, %s583_s13  ;;  %p587_p9 = scmp.lt.u32.totalorder %s583_s13, %s787_s0 }
  0x18   :  { %p589_p10 = pnand %p587_p9, %p584_p8 }
  0x1a   :  { %592 = shalt.err (!%p589_p10)
}
  0x1b   :  { %s593_s1 = scalar_lea.vmem %s20_s8, 128  ;;  %p598_p12 = scmp.lt.s32.totalorder %s20_s8, %s20_s8 }
  0x1c   :  { %p594_p11 = scmp.ne.s32.totalorder %s20_s8, %s593_s1  ;;  %p599_p13 = scmp.lt.s32.totalorder %s593_s1, %s593_s1 }
  0x1e   :  { %p600_p0 = por %p599_p13, %p598_p12 }
  0x20   :  { %p601_p1 = pnand %p600_p0, %p594_p11 }
  0x22   :  { %604 = shalt.err (!%p601_p1)
}
  0x23   :  { %22 = dma.hbm_to_vmem [thread:$0]  %s787_s0, 128, %s20_s8, [#allocation4]  }
  0x24   :  { %s605_s22 = scalar_lea.hbm %s789_s2, 1024 }
  0x25   :  { %p606_p2 = scmp.ne.s32.totalorder %s789_s2, %s605_s22  ;;  %p609_p3 = scmp.lt.u32.totalorder %s605_s22, %s789_s2 }
  0x27   :  { %p611_p4 = pnand %p609_p3, %p606_p2 }
  0x29   :  { %614 = shalt.err (!%p611_p4)
}
  0x2a   :  { %s615_s27 = scalar_lea.vmem %s41_s10, 1024  ;;  %p620_p6 = scmp.lt.s32.totalorder %s41_s10, %s41_s10 }
  0x2b   :  { %p616_p5 = scmp.ne.s32.totalorder %s41_s10, %s615_s27  ;;  %p621_p7 = scmp.lt.s32.totalorder %s615_s27, %s615_s27 }
  0x2d   :  { %p622_p8 = por %p621_p7, %p620_p6 }
  0x2f   :  { %p623_p9 = pnand %p622_p8, %p616_p5 }
  0x31   :  { %626 = shalt.err (!%p623_p9)
}
  0x32   :  { %46 = dma.hbm_to_vmem [thread:$0]  %s789_s2, 1024, %s41_s10, [#allocation6], %s656_s28, %s656_s28, %s657_s29  }
  0x33   :  { %s660_s6 = smov [#allocation8]   ;;  %s627_s11 = scalar_lea.hbm %s790_s3, 1024 }
  0x34   :  { %s52_s7 = sshll.u32 %s660_s6, 4  ;;  %p628_p10 = scmp.ne.s32.totalorder %s790_s3, %s627_s11  ;;  %s53_s7 = int_to_ptr.vmem [resolvable:$true] %s52_s7 }
  0x35   :  { %p631_p11 = scmp.lt.u32.totalorder %s627_s11, %s790_s3 }
  0x37   :  { %p633_p12 = pnand %p631_p11, %p628_p10 }
  0x39   :  { %636 = shalt.err (!%p633_p12)
}
  0x3a   :  { %s637_s16 = scalar_lea.vmem %s53_s7, 1024  ;;  %p642_p0 = scmp.lt.s32.totalorder %s53_s7, %s53_s7 }
  0x3b   :  { %p638_p13 = scmp.ne.s32.totalorder %s53_s7, %s637_s16  ;;  %p643_p1 = scmp.lt.s32.totalorder %s637_s16, %s637_s16 }
  0x3d   :  { %p644_p2 = por %p643_p1, %p642_p0 }
  0x3f   :  { %p645_p3 = pnand %p644_p2, %p638_p13 }
  0x41   :  { %648 = shalt.err (!%p645_p3)
}
  0x42   :  { %58 = dma.hbm_to_vmem [thread:$0]  %s790_s3, 1024, %s53_s7, [#allocation9], %s656_s28, %s656_s28, %s657_s29  }
  0x43   :  { %649 = dma.done.wait [#allocation4], 128  }
  0x44   :  { %650 = vsyncadd [#allocation4], 4294967168 }
  0x45   :  { %651 = dma.done.wait [#allocation6], 2048  }
  0x46   :  { %652 = vsyncadd [#allocation6], 4294965248 }
  0x47   :  { %653 = dma.done.wait [#allocation9], 1024  }
  0x48   :  { %654 = vsyncadd [#allocation9], 4294966272  ;;  %v661_v0 = vmov 0.0   ;;  %vm662_vm0 = vmmov 0   ;;  %v537_v1 = vld [vmem:[#allocation5] sm:$0xff]   ;;  %v538_v2 = vld [vmem:[#allocation5 + $0x8] sm:$0xff]   ;;  %v97_v26 = vlaneseq }
  0x49   :  { %469 = vmatprep.subr.bf16.mxu0 %v661_v0  ;;  %74 = vst [vmem:[#allocation2] sm:$0xff] %v661_v0  ;;  %485 = vmatprep.mubr.msk.bf16.mxu0 %vm662_vm0, %v661_v0  ;;  %v539_v3 = vld [vmem:[#allocation5 + $0x10] sm:$0xff]   ;;  %vm76_vm1 = vcmask 89088   ;;  %v75_v4 = vld [vmem:[#allocation3] sm:$0xff]  ;;  %v545_v5 = vld [vmem:[#allocation7] sm:$0xff]   ;;  %vm409_vm2 = vcmask 15360  }
  0x4a   :  { %489 = vmatprep.subr.bf16.mxu1 %v661_v0  ;;  %505 = vmatprep.mubr.msk.bf16.mxu1 %vm662_vm0, %v661_v0  ;;  %77 = vst.msk [vmem:[#allocation2] sm:$0xff] %vm76_vm1, %v75_v4  ;;  %v540_v6 = vld [vmem:[#allocation5 + $0x18] sm:$0xff]   ;;  %v546_v7 = vld [vmem:[#allocation7 + $0x8] sm:$0xff]   ;;  %v541_v8 = vld [vmem:[#allocation5 + $0x20] sm:$0xff]   ;;  %v98_v27 = vshrl.u32 %v97_v26, 7 }
  0x4b   :  { %470 = vmatpush3.bf16.msra.mxu0 %v537_v1  ;;  %490 = vmatpush3.bf16.msra.mxu1 %v545_v5  ;;  %v547_v9 = vld [vmem:[#allocation7 + $0x10] sm:$0xff]   ;;  %v542_v10 = vld [vmem:[#allocation5 + $0x28] sm:$0xff]   ;;  %v548_v11 = vld [vmem:[#allocation7 + $0x18] sm:$0xff]  }
  0x4c   :  { %471 = vmatprep.subr.bf16.mxu0 %v661_v0  ;;  %491 = vmatprep.subr.bf16.mxu1 %v661_v0  ;;  %v543_v12 = vld [vmem:[#allocation5 + $0x30] sm:$0xff]   ;;  %v549_v13 = vld [vmem:[#allocation7 + $0x20] sm:$0xff]   ;;  %v544_v14 = vld [vmem:[#allocation5 + $0x38] sm:$0xff]   ;;  %v99_v28 = vsub.s32 0, %v98_v27  ;;  %v209_v40 = vsub.s32 1, %v98_v27  ;;  %v319_v49 = vsub.s32 2, %v98_v27 }
  0x4d   :  { %v550_v16 = vld [vmem:[#allocation7 + $0x28] sm:$0xff]   ;;  %v551_v18 = vld [vmem:[#allocation7 + $0x30] sm:$0xff]   ;;  %v552_v19 = vld [vmem:[#allocation7 + $0x38] sm:$0xff]  }
  0x4e   :  { %v553_v20 = vld [vmem:[#allocation8] sm:$0xff]   ;;  %v554_v21 = vld [vmem:[#allocation8 + $0x8] sm:$0xff]   ;;  %v555_v22 = vld [vmem:[#allocation8 + $0x10] sm:$0xff]  }
  0x4f   :  { %472 = vmatpush3.bf16.msra.mxu0 %v538_v2  ;;  %492 = vmatpush3.bf16.msra.mxu1 %v546_v7  ;;  %v556_v23 = vld [vmem:[#allocation8 + $0x18] sm:$0xff]   ;;  %v557_v24 = vld [vmem:[#allocation8 + $0x20] sm:$0xff]   ;;  %v558_v25 = vld [vmem:[#allocation8 + $0x28] sm:$0xff]  }
  0x50   :  { %473 = vmatprep.subr.bf16.mxu0 %v661_v0  ;;  %493 = vmatprep.subr.bf16.mxu1 %v661_v0  ;;  %v80_v29 = vld [vmem:[%s791_s4] sm:$0xff]  ;;  %v560_v39 = vld [vmem:[#allocation8 + $0x38] sm:$0xff]  }
  0x51   :  { %v78_v15 = vld [vmem:[#allocation2] sm:$0xff]  ;;  %v100_v30 = vrot.slane %v80_v29, %v99_v28  ;;  %v210_v41 = vrot.slane %v80_v29, %v209_v40  ;;  %v320_v50 = vrot.slane %v80_v29, %v319_v49 }
  0x52   :  { %v79_v17 = vpack.c.bf16 %v78_v15, %v78_v15  ;;  %v559_v38 = vld [vmem:[#allocation8 + $0x30] sm:$0xff]  }
  0x53   :  { %474 = vmatpush3.bf16.msra.mxu0 %v539_v3  ;;  %494 = vmatpush3.bf16.msra.mxu1 %v547_v9 }
  0x54   :  { %475 = vmatprep.subr.bf16.mxu0 %v661_v0  ;;  %495 = vmatprep.subr.bf16.mxu1 %v661_v0 }
  0x57   :  { %476 = vmatpush3.bf16.msra.mxu0 %v540_v6  ;;  %496 = vmatpush3.bf16.msra.mxu1 %v548_v11 }
  0x58   :  { %477 = vmatprep.subr.bf16.mxu0 %v661_v0  ;;  %497 = vmatprep.subr.bf16.mxu1 %v661_v0 }
  0x5b   :  { %478 = vmatpush3.bf16.msra.mxu0 %v541_v8  ;;  %498 = vmatpush3.bf16.msra.mxu1 %v549_v13 }
  0x5c   :  { %479 = vmatprep.subr.bf16.mxu0 %v661_v0  ;;  %499 = vmatprep.subr.bf16.mxu1 %v661_v0 }
  0x5f   :  { %480 = vmatpush3.bf16.msra.mxu0 %v542_v10  ;;  %500 = vmatpush3.bf16.msra.mxu1 %v550_v16 }
  0x60   :  { %481 = vmatprep.subr.bf16.mxu0 %v661_v0  ;;  %501 = vmatprep.subr.bf16.mxu1 %v661_v0 }
  0x63   :  { %482 = vmatpush3.bf16.msra.mxu0 %v543_v12  ;;  %502 = vmatpush3.bf16.msra.mxu1 %v551_v18 }
  0x64   :  { %483 = vmatprep.subr.bf16.mxu0 %v661_v0  ;;  %503 = vmatprep.subr.bf16.mxu1 %v661_v0 }
  0x67   :  { %484 = vmatpush3.bf16.msra.mxu0 %v544_v14  ;;  %504 = vmatpush3.bf16.msra.mxu1 %v552_v19 }
  0x68   :  { %509 = vmatprep.subr.bf16.mxu0 %v661_v0 }
  0x6a   :  { %486 = vmatmul.mubr.bf16.vlgmr.msra.gmra.mrb[0].mxu0 %v79_v17 }
  0x6b   :  { %525 = vmatprep.mubr.msk.bf16.mxu0 %vm662_vm0, %v661_v0  ;;  %510 = vmatpush3.bf16.msra.mxu0 %v553_v20 }
  0x6c   :  { %511 = vmatprep.subr.bf16.mxu0 %v661_v0 }
  0x6f   :  { %512 = vmatpush3.bf16.msra.mxu0 %v554_v21 }
  0x70   :  { %513 = vmatprep.subr.bf16.mxu0 %v661_v0 }
  0x73   :  { %514 = vmatpush3.bf16.msra.mxu0 %v555_v22 }
  0x74   :  { %515 = vmatprep.subr.bf16.mxu0 %v661_v0 }
  0x77   :  { %516 = vmatpush3.bf16.msra.mxu0 %v556_v23 }
  0x78   :  { %517 = vmatprep.subr.bf16.mxu0 %v661_v0 }
  0x7b   :  { %518 = vmatpush3.bf16.msra.mxu0 %v557_v24 }
  0x7c   :  { %519 = vmatprep.subr.bf16.mxu0 %v661_v0 }
  0x7f   :  { %520 = vmatpush3.bf16.msra.mxu0 %v558_v25 }
  0x80   :  { %521 = vmatprep.subr.bf16.mxu0 %v661_v0 }
  0x83   :  { %522 = vmatpush3.bf16.msra.mxu0 %v559_v38 }
  0x84   :  { %523 = vmatprep.subr.bf16.mxu0 %v661_v0 }
  0x87   :  { %524 = vmatpush3.bf16.msra.mxu0 %v560_v39 }
 0x13d   :  { %v183_v31 = vpop.f32.mrb[0].mxu0 }
 0x13e   :  { %v184_v32 = vadd.f32 %v183_v31, %v100_v30  ;;  %v487_v33 = vpop.f32.mrb[1].mxu0 }
 0x13f   :  { %v186_v34 = vpop.f32.mrb[2].mxu0 }
 0x140   :  { %v189_v35 = vmax.f32 %v184_v32, 0.0  ;;  %v488_v36 = vpop.f32.mrb[3].mxu0 }
 0x142   :  { %v190_v37 = vpack.c.bf16 %v189_v35, %v189_v35 }
 0x144   :  { %506 = vmatmul.mubr.bf16.vlgmr.msra.gmra.mrb[0].mxu1 %v190_v37 }
 0x217   :  { %v293_v42 = vpop.f32.mrb[0].mxu1 }
 0x218   :  { %v294_v43 = vadd.f32 %v293_v42, %v210_v41  ;;  %v507_v44 = vpop.f32.mrb[1].mxu1 }
 0x219   :  { %v296_v45 = vpop.f32.mrb[2].mxu1 }
 0x21a   :  { %v299_v46 = vmax.f32 %v294_v43, 0.0  ;;  %v508_v47 = vpop.f32.mrb[3].mxu1 }
 0x21c   :  { %v300_v48 = vpack.c.bf16 %v299_v46, %v299_v46 }
 0x21e   :  { %526 = vmatmul.mubr.bf16.vlgmr.msra.gmra.mrb[4].mxu0 %v300_v48 }
 0x2f1   :  { %v403_v51 = vpop.f32.mrb[4].mxu0 }
 0x2f2   :  { %v404_v52 = vadd.f32 %v403_v51, %v320_v50  ;;  %v527_v53 = vpop.f32.mrb[5].mxu0 }
 0x2f3   :  { %v406_v54 = vpop.f32.mrb[6].mxu0 }
 0x2f4   :  { %410 = vst.msk [vmem:[%s792_s5] sm:$0xff] %vm409_vm2, %v404_v52  ;;  %v528_v55 = vpop.f32.mrb[7].mxu0 }
 0x2f5   :  { %415 = vsyncpa [#allocation4], 1 }
 0x2f6   :  { %416 = vsyncpa [#allocation6], 1 }
 0x2f7   :  { %417 = vsyncpa [#allocation9], 1 }

</bundles_post_ra>
